<compile_context>
chip_gen: v7x
topology: tpu7x:2x2x1
jax: 0.10.0
libtpu: 0.0.40
codegen_flags: <defaults>
</compile_context>

<pallas_src>
import jax
import jax.numpy as jnp
from jax.experimental import pallas as pl
from jax.experimental.pallas import tpu as pltpu


def conv1x1_mlp_kernel(x_ref, w1_ref, b1_ref, w2_ref, b2_ref, o_ref):
    # x_ref:  (Nb, C_in,  HWt)     batch-chunk of images, channels x pixels
    # w1_ref: (C_hid, C_in)        first 1x1 conv weights
    # b1_ref: (C_hid, 1)
    # w2_ref: (C_out, C_hid)       second 1x1 conv weights
    # b2_ref: (C_out, 1)
    # o_ref:  (Nb, C_out + 1, HWt) rows [0:C_out) = conv output,
    #                              row C_out = copy of channel 0 (fused v4)
    Nb = x_ref.shape[0]
    C_out = w2_ref.shape[0]
    w1 = w1_ref[...]
    b1 = b1_ref[...]
    w2 = w2_ref[...]
    b2 = b2_ref[...]
    # Static (unrolled) loop over the images in this block; each image is a
    # plain 2-D channels x pixels matmul pair, keeping stores lane-dense.
    for i in range(Nb):
        x = x_ref[i]                                                  # (C_in, HWt)
        h = jnp.dot(w1, x, preferred_element_type=jnp.float32)
        h = jnp.maximum(h + b1, 0.0)                                  # ReLU
        y = jnp.dot(w2, h, preferred_element_type=jnp.float32) + b2   # (C_out, HWt)
        # Full unmasked store for the 16-channel body ...
        o_ref[i, 0:C_out, :] = y.astype(o_ref.dtype)
        # ... and a single-row slice store for the fused extra channel.
        o_ref[i, C_out:C_out + 1, :] = y[0:1, :].astype(o_ref.dtype)


def conv1x1_mlp_cat(x_nchw, w1, b1, w2, b2, *, batch_block=None, hw_block=None):
    """Fused conv->relu->conv (+17th channel) kernel on NCHW input."""
    N, C_in, H, W = x_nchw.shape
    HW = H * W
    C_hid = w1.shape[0]
    C_out = w2.shape[0]

    # ---- Batch block: largest divisor of N (<= 8) that still leaves >= 2
    # grid steps when N > 1 (keeps both v7x TensorCores busy; neutral on
    # single-TC v5e/v6e).
    if batch_block is None:
        Nb = 1
        for cand in range(min(N, 8), 0, -1):
            if N % cand == 0 and (N == 1 or N // cand >= 2):
                Nb = cand
                break
    else:
        Nb = batch_block

    # ---- HW (lane) tile: full HW if the double-buffered in+out blocks fit a
    # modest VMEM budget, otherwise a multiple of 128 that divides HW.
    if hw_block is None:
        budget = 16 << 20
        bytes_per_lane = 2 * 4 * Nb * (C_in + C_out + 1)  # 2 bufs * f32 * rows
        if HW % 128 != 0 or HW * bytes_per_lane <= budget:
            HWt = HW
        else:
            HWt = max(128, (budget // bytes_per_lane) // 128 * 128)
            HWt = min(HWt, HW)
            while HW % HWt != 0:
                HWt -= 128
    else:
        HWt = hw_block

    # Contiguous reshape only (no data movement): (N, C_in, H, W) -> (N, C_in, HW).
    x3 = x_nchw.reshape(N, C_in, HW)

    grid = (pl.cdiv(N, Nb), pl.cdiv(HW, HWt))

    out = pl.pallas_call(
        conv1x1_mlp_kernel,
        out_shape=jax.ShapeDtypeStruct((N, C_out + 1, HW), jnp.float32),
        grid_spec=pltpu.PrefetchScalarGridSpec(
            num_scalar_prefetch=0,
            grid=grid,
            in_specs=[
                # Batch-chunk slab: (Nb, C_in, HWt); lane-dense HW last.
                pl.BlockSpec((Nb, C_in, HWt), lambda n, l: (n, 0, l)),
                pl.BlockSpec((C_hid, C_in), lambda n, l: (0, 0)),   # w1 (resident)
                pl.BlockSpec((C_hid, 1), lambda n, l: (0, 0)),      # b1
                pl.BlockSpec((C_out, C_hid), lambda n, l: (0, 0)),  # w2
                pl.BlockSpec((C_out, 1), lambda n, l: (0, 0)),      # b2
            ],
            out_specs=pl.BlockSpec((Nb, C_out + 1, HWt), lambda n, l: (n, 0, l)),
        ),
        compiler_params=pltpu.CompilerParams(
            dimension_semantics=("parallel", "parallel")),
    )(x3, w1, b1, w2, b2)

    # Contiguous reshape back to image layout: (N, C_out+1, H, W).
    return out.reshape(N, C_out + 1, H, W)


def model_forward(x, w1, b1, w2, b2):
    # x: (N, C_in, H, W), NCHW — same convention as the PyTorch module.
    #
    # v2 = torch.cat(torch.unbind(v1, 1), 1) is, for contiguous v1, a reshape
    # to (N, C_out*H, W); v3 is a no-op slice; v4 = v2[:, :H] == v1[:, 0].
    #
    # TODO(synk): torch.cat((v1, v4), dim=1) is ill-formed in PyTorch itself
    # (4-D vs 3-D tensors raise at runtime); we expose v4 as one extra output
    # channel, which the kernel writes directly as row C_out (fused, no extra
    # HBM pass).
    return conv1x1_mlp_cat(x, w1, b1, w2, b2)


def _reference_forward(x, w1, b1, w2, b2):
    # Pure-JAX reference (1x1 convs == per-pixel matmuls over channels).
    h = jnp.einsum('oc,nchw->nohw', w1, x) + b1[None, :, 0, None, None]
    h = jnp.maximum(h, 0.0)
    v1 = jnp.einsum('oc,nchw->nohw', w2, h) + b2[None, :, 0, None, None]
    v4 = v1[:, 0]
    return jnp.concatenate((v1, v4[:, None, :, :]), axis=1)


if __name__ == "__main__":
    key = jax.random.PRNGKey(0)
    kx, k1, kb1, k2, kb2 = jax.random.split(key, 5)

    # Small shapes consistent with the module: N=8, C_in=3, H=W=16.
    N, C_in, H, W = 8, 3, 16, 16
    C_hid, C_out = 8, 16

    x = jax.random.normal(kx, (N, C_in, H, W), dtype=jnp.float32)

    # Deterministic synthetic parameters (Conv2d(..., kernel_size=1) weights,
    # squeezed to 2-D since a 1x1 conv is a matmul over channels).
    w1 = 0.3 * jax.random.normal(k1, (C_hid, C_in), dtype=jnp.float32)
    b1 = 0.1 * jax.random.normal(kb1, (C_hid, 1), dtype=jnp.float32)
    w2 = 0.3 * jax.random.normal(k2, (C_out, C_hid), dtype=jnp.float32)
    b2 = 0.1 * jax.random.normal(kb2, (C_out, 1), dtype=jnp.float32)

    out = model_forward(x, w1, b1, w2, b2)
    out = jax.block_until_ready(out)

    ref = _reference_forward(x, w1, b1, w2, b2)
    assert out.shape == (N, C_out + 1, H, W), out.shape
    assert jnp.allclose(out, ref, atol=1e-5, rtol=1e-5), "mismatch vs reference"

    print("KERNEL_OK")
</pallas_src>

<mosaic_0001>
module attributes {stable_mosaic.version = 11 : i64} {
  func.func @conv1x1_mlp_kernel(%arg0: i32, %arg1: i32, %arg2: memref<4x3x256xf32, #tpu.memory_space<vmem>>, %arg3: memref<8x3xf32, #tpu.memory_space<vmem>>, %arg4: memref<8x1xf32, #tpu.memory_space<vmem>>, %arg5: memref<16x8xf32, #tpu.memory_space<vmem>>, %arg6: memref<16x1xf32, #tpu.memory_space<vmem>>, %arg7: memref<4x17x256xf32, #tpu.memory_space<vmem>>) attributes {dimension_semantics = [#tpu.dimension_semantics<parallel>, #tpu.dimension_semantics<parallel>], iteration_bounds = array<i64: 2, 1>, scalar_prefetch = 0 : i64, scratch_operands = 0 : i64, tpu.core_type = #tpu.core_type<tc>, window_params = [{transform_indices = @transform_0, window_bounds = array<i64: 4, 3, 256>}, {pipeline_mode = #tpu.pipeline_mode<synchronous>, transform_indices = @transform_1, window_bounds = array<i64: 8, 3>}, {pipeline_mode = #tpu.pipeline_mode<synchronous>, transform_indices = @transform_2, window_bounds = array<i64: 8, 1>}, {pipeline_mode = #tpu.pipeline_mode<synchronous>, transform_indices = @transform_3, window_bounds = array<i64: 16, 8>}, {pipeline_mode = #tpu.pipeline_mode<synchronous>, transform_indices = @transform_4, window_bounds = array<i64: 16, 1>}, {transform_indices = @transform_5, window_bounds = array<i64: 4, 17, 256>}]} {
    %c0 = arith.constant 0 : index
    %c0_0 = arith.constant 0 : index
    %0 = vector.load %arg3[%c0, %c0_0] : memref<8x3xf32, #tpu.memory_space<vmem>>, vector<8x3xf32>
    %c0_1 = arith.constant 0 : index
    %c0_2 = arith.constant 0 : index
    %1 = vector.load %arg4[%c0_1, %c0_2] : memref<8x1xf32, #tpu.memory_space<vmem>>, vector<8x1xf32>
    %c0_3 = arith.constant 0 : index
    %c0_4 = arith.constant 0 : index
    %2 = vector.load %arg5[%c0_3, %c0_4] : memref<16x8xf32, #tpu.memory_space<vmem>>, vector<16x8xf32>
    %c0_5 = arith.constant 0 : index
    %c0_6 = arith.constant 0 : index
    %3 = vector.load %arg6[%c0_5, %c0_6] : memref<16x1xf32, #tpu.memory_space<vmem>>, vector<16x1xf32>
    %c0_7 = arith.constant 0 : index
    %c0_8 = arith.constant 0 : index
    %c0_9 = arith.constant 0 : index
    %4 = vector.load %arg2[%c0_7, %c0_8, %c0_9] : memref<4x3x256xf32, #tpu.memory_space<vmem>>, vector<1x3x256xf32>
    %5 = vector.shape_cast %4 : vector<1x3x256xf32> to vector<3x256xf32>
    %cst = arith.constant dense<0.000000e+00> : vector<8x256xf32>
    %6 = tpu.matmul %0, %5, %cst {dimension_numbers = #tpu.dot_dimension_numbers<[1], [0], [0], [1], [0, 0, 1, 1], [], []>} : vector<8x3xf32>, vector<3x256xf32>, vector<8x256xf32> -> vector<8x256xf32>
    %7 = vector.broadcast %1 : vector<8x1xf32> to vector<8x256xf32>
    %8 = arith.addf %6, %7 : vector<8x256xf32>
    %cst_10 = arith.constant 0.000000e+00 : f32
    %9 = vector.broadcast %cst_10 : f32 to vector<8x256xf32>
    %10 = arith.maximumf %8, %9 : vector<8x256xf32>
    %cst_11 = arith.constant dense<0.000000e+00> : vector<16x256xf32>
    %11 = tpu.matmul %2, %10, %cst_11 {dimension_numbers = #tpu.dot_dimension_numbers<[1], [0], [0], [1], [0, 0, 1, 1], [], []>} : vector<16x8xf32>, vector<8x256xf32>, vector<16x256xf32> -> vector<16x256xf32>
    %12 = vector.broadcast %3 : vector<16x1xf32> to vector<16x256xf32>
    %13 = arith.addf %11, %12 : vector<16x256xf32>
    %c0_12 = arith.constant 0 : index
    %c0_13 = arith.constant 0 : index
    %c0_14 = arith.constant 0 : index
    %14 = vector.load %arg7[%c0_12, %c0_13, %c0_14] : memref<4x17x256xf32, #tpu.memory_space<vmem>>, vector<1x16x256xf32>
    %15 = vector.shape_cast %14 : vector<1x16x256xf32> to vector<16x256xf32>
    %16 = vector.shape_cast %13 : vector<16x256xf32> to vector<1x16x256xf32>
    tpu.vector_store %arg7[%c0_12, %c0_13, %c0_14], %16 {strides = array<i32>} : memref<4x17x256xf32, #tpu.memory_space<vmem>>, vector<1x16x256xf32>,
    %17 = vector.extract_strided_slice %13 {offsets = [0, 0], sizes = [1, 256], strides = [1, 1]} : vector<16x256xf32> to vector<1x256xf32>
    %c0_15 = arith.constant 0 : index
    %c16 = arith.constant 16 : index
    %c0_16 = arith.constant 0 : index
    %18 = vector.load %arg7[%c0_15, %c16, %c0_16] : memref<4x17x256xf32, #tpu.memory_space<vmem>>, vector<1x1x256xf32>
    %19 = vector.shape_cast %18 : vector<1x1x256xf32> to vector<1x256xf32>
    %20 = vector.shape_cast %17 : vector<1x256xf32> to vector<1x1x256xf32>
    tpu.vector_store %arg7[%c0_15, %c16, %c0_16], %20 {strides = array<i32>} : memref<4x17x256xf32, #tpu.memory_space<vmem>>, vector<1x1x256xf32>,
    %c1 = arith.constant 1 : index
    %c0_17 = arith.constant 0 : index
    %c0_18 = arith.constant 0 : index
    %21 = vector.load %arg2[%c1, %c0_17, %c0_18] : memref<4x3x256xf32, #tpu.memory_space<vmem>>, vector<1x3x256xf32>
    %22 = vector.shape_cast %21 : vector<1x3x256xf32> to vector<3x256xf32>
    %cst_19 = arith.constant dense<0.000000e+00> : vector<8x256xf32>
    %23 = tpu.matmul %0, %22, %cst_19 {dimension_numbers = #tpu.dot_dimension_numbers<[1], [0], [0], [1], [0, 0, 1, 1], [], []>} : vector<8x3xf32>, vector<3x256xf32>, vector<8x256xf32> -> vector<8x256xf32>
    %24 = vector.broadcast %1 : vector<8x1xf32> to vector<8x256xf32>
    %25 = arith.addf %23, %24 : vector<8x256xf32>
    %cst_20 = arith.constant 0.000000e+00 : f32
    %26 = vector.broadcast %cst_20 : f32 to vector<8x256xf32>
    %27 = arith.maximumf %25, %26 : vector<8x256xf32>
    %cst_21 = arith.constant dense<0.000000e+00> : vector<16x256xf32>
    %28 = tpu.matmul %2, %27, %cst_21 {dimension_numbers = #tpu.dot_dimension_numbers<[1], [0], [0], [1], [0, 0, 1, 1], [], []>} : vector<16x8xf32>, vector<8x256xf32>, vector<16x256xf32> -> vector<16x256xf32>
    %29 = vector.broadcast %3 : vector<16x1xf32> to vector<16x256xf32>
    %30 = arith.addf %28, %29 : vector<16x256xf32>
    %c1_22 = arith.constant 1 : index
    %c0_23 = arith.constant 0 : index
    %c0_24 = arith.constant 0 : index
    %31 = vector.load %arg7[%c1_22, %c0_23, %c0_24] : memref<4x17x256xf32, #tpu.memory_space<vmem>>, vector<1x16x256xf32>
    %32 = vector.shape_cast %31 : vector<1x16x256xf32> to vector<16x256xf32>
    %33 = vector.shape_cast %30 : vector<16x256xf32> to vector<1x16x256xf32>
    tpu.vector_store %arg7[%c1_22, %c0_23, %c0_24], %33 {strides = array<i32>} : memref<4x17x256xf32, #tpu.memory_space<vmem>>, vector<1x16x256xf32>,
    %34 = vector.extract_strided_slice %30 {offsets = [0, 0], sizes = [1, 256], strides = [1, 1]} : vector<16x256xf32> to vector<1x256xf32>
    %c1_25 = arith.constant 1 : index
    %c16_26 = arith.constant 16 : index
    %c0_27 = arith.constant 0 : index
    %35 = vector.load %arg7[%c1_25, %c16_26, %c0_27] : memref<4x17x256xf32, #tpu.memory_space<vmem>>, vector<1x1x256xf32>
    %36 = vector.shape_cast %35 : vector<1x1x256xf32> to vector<1x256xf32>
    %37 = vector.shape_cast %34 : vector<1x256xf32> to vector<1x1x256xf32>
    tpu.vector_store %arg7[%c1_25, %c16_26, %c0_27], %37 {strides = array<i32>} : memref<4x17x256xf32, #tpu.memory_space<vmem>>, vector<1x1x256xf32>,
    %c2 = arith.constant 2 : index
    %c0_28 = arith.constant 0 : index
    %c0_29 = arith.constant 0 : index
    %38 = vector.load %arg2[%c2, %c0_28, %c0_29] : memref<4x3x256xf32, #tpu.memory_space<vmem>>, vector<1x3x256xf32>
    %39 = vector.shape_cast %38 : vector<1x3x256xf32> to vector<3x256xf32>
    %cst_30 = arith.constant dense<0.000000e+00> : vector<8x256xf32>
    %40 = tpu.matmul %0, %39, %cst_30 {dimension_numbers = #tpu.dot_dimension_numbers<[1], [0], [0], [1], [0, 0, 1, 1], [], []>} : vector<8x3xf32>, vector<3x256xf32>, vector<8x256xf32> -> vector<8x256xf32>
    %41 = vector.broadcast %1 : vector<8x1xf32> to vector<8x256xf32>
    %42 = arith.addf %40, %41 : vector<8x256xf32>
    %cst_31 = arith.constant 0.000000e+00 : f32
    %43 = vector.broadcast %cst_31 : f32 to vector<8x256xf32>
    %44 = arith.maximumf %42, %43 : vector<8x256xf32>
    %cst_32 = arith.constant dense<0.000000e+00> : vector<16x256xf32>
    %45 = tpu.matmul %2, %44, %cst_32 {dimension_numbers = #tpu.dot_dimension_numbers<[1], [0], [0], [1], [0, 0, 1, 1], [], []>} : vector<16x8xf32>, vector<8x256xf32>, vector<16x256xf32> -> vector<16x256xf32>
    %46 = vector.broadcast %3 : vector<16x1xf32> to vector<16x256xf32>
    %47 = arith.addf %45, %46 : vector<16x256xf32>
    %c2_33 = arith.constant 2 : index
    %c0_34 = arith.constant 0 : index
    %c0_35 = arith.constant 0 : index
    %48 = vector.load %arg7[%c2_33, %c0_34, %c0_35] : memref<4x17x256xf32, #tpu.memory_space<vmem>>, vector<1x16x256xf32>
    %49 = vector.shape_cast %48 : vector<1x16x256xf32> to vector<16x256xf32>
    %50 = vector.shape_cast %47 : vector<16x256xf32> to vector<1x16x256xf32>
    tpu.vector_store %arg7[%c2_33, %c0_34, %c0_35], %50 {strides = array<i32>} : memref<4x17x256xf32, #tpu.memory_space<vmem>>, vector<1x16x256xf32>,
    %51 = vector.extract_strided_slice %47 {offsets = [0, 0], sizes = [1, 256], strides = [1, 1]} : vector<16x256xf32> to vector<1x256xf32>
    %c2_36 = arith.constant 2 : index
    %c16_37 = arith.constant 16 : index
    %c0_38 = arith.constant 0 : index
    %52 = vector.load %arg7[%c2_36, %c16_37, %c0_38] : memref<4x17x256xf32, #tpu.memory_space<vmem>>, vector<1x1x256xf32>
    %53 = vector.shape_cast %52 : vector<1x1x256xf32> to vector<1x256xf32>
    %54 = vector.shape_cast %51 : vector<1x256xf32> to vector<1x1x256xf32>
    tpu.vector_store %arg7[%c2_36, %c16_37, %c0_38], %54 {strides = array<i32>} : memref<4x17x256xf32, #tpu.memory_space<vmem>>, vector<1x1x256xf32>,
    %c3 = arith.constant 3 : index
    %c0_39 = arith.constant 0 : index
    %c0_40 = arith.constant 0 : index
    %55 = vector.load %arg2[%c3, %c0_39, %c0_40] : memref<4x3x256xf32, #tpu.memory_space<vmem>>, vector<1x3x256xf32>
    %56 = vector.shape_cast %55 : vector<1x3x256xf32> to vector<3x256xf32>
    %cst_41 = arith.constant dense<0.000000e+00> : vector<8x256xf32>
    %57 = tpu.matmul %0, %56, %cst_41 {dimension_numbers = #tpu.dot_dimension_numbers<[1], [0], [0], [1], [0, 0, 1, 1], [], []>} : vector<8x3xf32>, vector<3x256xf32>, vector<8x256xf32> -> vector<8x256xf32>
    %58 = vector.broadcast %1 : vector<8x1xf32> to vector<8x256xf32>
    %59 = arith.addf %57, %58 : vector<8x256xf32>
    %cst_42 = arith.constant 0.000000e+00 : f32
    %60 = vector.broadcast %cst_42 : f32 to vector<8x256xf32>
    %61 = arith.maximumf %59, %60 : vector<8x256xf32>
    %cst_43 = arith.constant dense<0.000000e+00> : vector<16x256xf32>
    %62 = tpu.matmul %2, %61, %cst_43 {dimension_numbers = #tpu.dot_dimension_numbers<[1], [0], [0], [1], [0, 0, 1, 1], [], []>} : vector<16x8xf32>, vector<8x256xf32>, vector<16x256xf32> -> vector<16x256xf32>
    %63 = vector.broadcast %3 : vector<16x1xf32> to vector<16x256xf32>
    %64 = arith.addf %62, %63 : vector<16x256xf32>
    %c3_44 = arith.constant 3 : index
    %c0_45 = arith.constant 0 : index
    %c0_46 = arith.constant 0 : index
    %65 = vector.load %arg7[%c3_44, %c0_45, %c0_46] : memref<4x17x256xf32, #tpu.memory_space<vmem>>, vector<1x16x256xf32>
    %66 = vector.shape_cast %65 : vector<1x16x256xf32> to vector<16x256xf32>
    %67 = vector.shape_cast %64 : vector<16x256xf32> to vector<1x16x256xf32>
    tpu.vector_store %arg7[%c3_44, %c0_45, %c0_46], %67 {strides = array<i32>} : memref<4x17x256xf32, #tpu.memory_space<vmem>>, vector<1x16x256xf32>,
    %68 = vector.extract_strided_slice %64 {offsets = [0, 0], sizes = [1, 256], strides = [1, 1]} : vector<16x256xf32> to vector<1x256xf32>
    %c3_47 = arith.constant 3 : index
    %c16_48 = arith.constant 16 : index
    %c0_49 = arith.constant 0 : index
    %69 = vector.load %arg7[%c3_47, %c16_48, %c0_49] : memref<4x17x256xf32, #tpu.memory_space<vmem>>, vector<1x1x256xf32>
    %70 = vector.shape_cast %69 : vector<1x1x256xf32> to vector<1x256xf32>
    %71 = vector.shape_cast %68 : vector<1x256xf32> to vector<1x1x256xf32>
    tpu.vector_store %arg7[%c3_47, %c16_48, %c0_49], %71 {strides = array<i32>} : memref<4x17x256xf32, #tpu.memory_space<vmem>>, vector<1x1x256xf32>,
    return
  }
  func.func @transform_0(%arg0: i32, %arg1: i32) -> (i32, i32, i32) {
    %c0_i32 = arith.constant 0 : i32
    %c0_i32_0 = arith.constant 0 : i32
    return %arg0, %c0_i32, %arg1 : i32, i32, i32
  }
  func.func @transform_1(%arg0: i32, %arg1: i32) -> (i32, i32) {
    %c0_i32 = arith.constant 0 : i32
    %c0_i32_0 = arith.constant 0 : i32
    %c0_i32_1 = arith.constant 0 : i32
    return %c0_i32, %c0_i32_0 : i32, i32
  }
  func.func @transform_2(%arg0: i32, %arg1: i32) -> (i32, i32) {
    %c0_i32 = arith.constant 0 : i32
    %c0_i32_0 = arith.constant 0 : i32
    %c0_i32_1 = arith.constant 0 : i32
    return %c0_i32, %c0_i32_0 : i32, i32
  }
  func.func @transform_3(%arg0: i32, %arg1: i32) -> (i32, i32) {
    %c0_i32 = arith.constant 0 : i32
    %c0_i32_0 = arith.constant 0 : i32
    %c0_i32_1 = arith.constant 0 : i32
    return %c0_i32, %c0_i32_0 : i32, i32
  }
  func.func @transform_4(%arg0: i32, %arg1: i32) -> (i32, i32) {
    %c0_i32 = arith.constant 0 : i32
    %c0_i32_0 = arith.constant 0 : i32
    %c0_i32_1 = arith.constant 0 : i32
    return %c0_i32, %c0_i32_0 : i32, i32
  }
  func.func @transform_5(%arg0: i32, %arg1: i32) -> (i32, i32, i32) {
    %c0_i32 = arith.constant 0 : i32
    %c0_i32_0 = arith.constant 0 : i32
    return %arg0, %c0_i32, %arg1 : i32, i32, i32
  }
}

</mosaic_0001>

<bundles_post_ra>
// kernel: tpu_custom_call.1
= control target key start
LH: loop header
LB: loop body
LE: loop exit
PB: predicated region body
PF: predicated region fallthrough
CT: control target
= control target key end

     0   :  { %s1279_s18 = smov 0   ;;  %s1281_s19 = smov 0   ;;  %s1458_s0 = inlined_call_operand.vmem [shape: f32[8,3,256], index: 0, kind: input, shape index: {}]   ;;  %s1459_s1 = inlined_call_operand.vmem [shape: f32[8,3], index: 1, kind: input, shape index: {}]   ;;  %s1460_s2 = inlined_call_operand.vmem [shape: f32[8,1], index: 2, kind: input, shape index: {}]   ;;  %s1461_s3 = inlined_call_operand.vmem [shape: f32[16,8], index: 3, kind: input, shape index: {}]   ;;  %s1462_s4 = inlined_call_operand.vmem [shape: f32[16,1], index: 4, kind: input, shape index: {}]   ;;  %s1463_s5 = inlined_call_operand.vmem [shape: f32[8,17,256], index: 5, kind: output, shape index: {}]  }
   0x1   :  { %s1283_s20 = smov 0  }
   0x2 LB: > { %s27_s21 = sadd.s32 1, %s1240_s19  ;;  %p1140_p0 = scmp.ge.s32.totalorder %s1244_s20, 1  ;;  %s1244_s20 = sphi %s1283_s20, %s15_s20   ;;  %s1240_s19 = sphi %s1281_s19, %s1467_s19   ;;  %s1236_s18 = sphi %s1279_s18, %s1466_s18  }
   0x3   : > { %p29_p1 = scmp.ge.s32.totalorder %s27_s21, 2  ;;  %p210_p2 = scmp.lt.s32.totalorder %s1244_s20, 3 }
   0x5   : > { %s1469_s21 = smov (%p29_p1, %s27_s21), 0  ;;  %p211_p3 = pnand %p1140_p0, %p210_p2 }
   0x6   : > { %s1141_s22 = sshll.u32 (!%p211_p3), %s1236_s18, 2  ;;  %v1246_v0 = vmov (!%p211_p3), 0.0   ;;  %v273_v1 = vld [vmem:[%s1460_s2] sm:$0xff] (!%p211_p3)  ;;  %v1247_v2 = vmov (!%p211_p3), 0   ;;  %vm290_vm0 = vcmask (!%p211_p3), 1042432   ;;  %vm286_vm1 = vcmask (!%p211_p3), 23552  }
   0x7   : > { %214 = sbr.rel (%p211_p3) target bundleno = 690 (0x2b2), region = 40  ;;  %p250_p4 = scmp.lt.s32.totalorder (!%p211_p3), %s1141_s22, 7  ;;  %359 = vmatprep.mubr.f32.mxu1 (!%p211_p3), %v1246_v0  ;;  %563 = vmatprep.mubr.f32.mxu0 (!%p211_p3), %v1246_v0  ;;  %v276_v3 = vld [vmem:[%s1462_s4] sm:$0xff] (!%p211_p3)  ;;  %v277_v9 = vld [vmem:[%s1462_s4 + $0x8] sm:$0xff] (!%p211_p3)  ;;  %vm378_vm2 = vcmask (!%p211_p3), 64512   ;;  %v472_v31 = vlaneseq (!%p211_p3) }
   0x8   : > { %1216 = vset.pattern.permute.xlu0 (!%p211_p3), %v1247_v2  ;;  %1217 = vset.pattern.permute.xlu1 (!%p211_p3), %v1247_v2  ;;  %v272_v8 = vld [vmem:[%s1459_s1] sm:$0xff] (!%p211_p3)  ;;  %v1351_v28 = vld [vmem:[%s1461_s3 + $0x8] sm:$0xff] (!%p211_p3)  ;;  %v1248_v29 = vmov (!%p211_p3), 1966171168  }
   0x9   : > { %281 = vperm.xlu0 (!%p211_p3), %1216, %v273_v1   ;;  %375 = vperm.xlu1 (!%p211_p3), %1217, %v277_v9   ;;  %v1340_v25 = vld [vmem:[%s1461_s3] sm:$0xff] (!%p211_p3)  ;;  %v470_v30 = vunpack.c.l.s4 (!%p211_p3), %v1248_v29  ;;  %v473_v33 = vshrl.u32 (!%p211_p3), %v472_v31, 7  ;;  %vm1393_vm3 = vcmp.lt.s32.totalorder (!%p211_p3), %v472_v31, 256 }
   0xb   : > { %v471_v32 = vunpack.c.0.s8 (!%p211_p3), %v470_v30 }
   0xd   : > { %370 = vperm.xlu0 (!%p211_p3), %1216, %v276_v3   ;;  %v1378_v42 = vsub.s32 (!%p211_p3), %v471_v32, %v473_v33 }
   0xe   : > { %s1471_s22 = smov (!%p250_p4, %s1141_s22), 7 }
   0xf   : > { %s1187_s27 = sshll.u32 %s1471_s22, 3  ;;  %s1188_s14 = smul.u32 48, %s1471_s22 }
  0x10   : > { %s1311_s30 = scalar_lea.vmem %s1458_s0, %s1187_s27 }
  0x11   : > { %v278_v4 = vld [vmem:[%s1311_s30] sm:$0x77]  ;;  %v1152_v5 = vld [vmem:[%s1311_s30 + $0x8] sm:$0x77]  ;;  %v1163_v19 = vld [vmem:[%s1311_s30 + $0x10] sm:$0x77]  ;;  %s1373_s17 = scalar_lea.vmem %s1463_s5, %s1188_s14 }
  0x12   : > { %v285_v6 = vcombine.high %v278_v4, %v278_v4  ;;  %v494_v7 = vcombine.high %v1152_v5, %v1152_v5  ;;  %v1174_v23 = vld [vmem:[%s1311_s30 + $0x18] sm:$0x77]  ;;  %v678_v26 = vcombine.high %v1163_v19, %v1163_v19 }
  0x13   : > { %v862_v27 = vcombine.high %v1174_v23, %v1174_v23 }
  0x14   : > { %1146 = vmatprep.subr.msk.mxu1 %vm290_vm0, %v285_v6  ;;  %1153 = vmatprep.subr.msk.mxu0 %vm290_vm0, %v494_v7 }
  0x15   : > { %1147 = vmatpush1.msk.msra.mxu1 %vm290_vm0, %v278_v4  ;;  %1154 = vmatpush1.msk.msra.mxu0 %vm290_vm0, %v1152_v5 }
  0x16   : > { %1148 = vmatmul.mubr.msk.f32.vlgmr.msra.gmra.mrb[0].mxu1 %vm286_vm1, %v272_v8  ;;  %1155 = vmatmul.mubr.msk.f32.vlgmr.msra.gmra.mrb[0].mxu0 %vm286_vm1, %v272_v8 }
  0x17   : > { %449 = vmatprep.mubr.f32.mxu1 %v1246_v0  ;;  %636 = vmatprep.mubr.f32.mxu0 %v1246_v0 }
  0x88   : > { %v1329_v10 = vpop.permute.xlu0 %281  ;;  %v1381_v44 = vpop.permute.xlu1 %375 }
  0x8c   : > { %v1368_v34 = vpop.permute.xlu0 %370 }
  0xe9   : > { %v361_v11 = vpop.f32.mrb[0].mxu1  ;;  %v565_v12 = vpop.f32.mrb[0].mxu0 }
  0xea   : > { %v362_v13 = vadd.f32 %v361_v11, %v1329_v10  ;;  %v566_v14 = vadd.f32 %v565_v12, %v1329_v10  ;;  %v363_v15 = vpop.f32.mrb[1].mxu1  ;;  %v567_v16 = vpop.f32.mrb[1].mxu0 }
  0xeb   : > { %v364_v17 = vadd.f32 %v363_v15, %v1329_v10  ;;  %v568_v18 = vadd.f32 %v567_v16, %v1329_v10 }
  0xec   : > { %v570_v20 = vmax.f32 %v566_v14, 0.0  ;;  %v366_v24 = vmax.f32 %v362_v13, 0.0 }
  0xed   : > { %v367_v21 = vmax.f32 %v364_v17, 0.0  ;;  %v571_v22 = vmax.f32 %v568_v18, 0.0 }
  0xef   : > { %385 = vmatprep.subr.mxu1 %v367_v21  ;;  %572 = vmatprep.subr.mxu0 %v571_v22 }
  0xf0   : > { %386 = vmatpush1.msra.mxu1 %v366_v24  ;;  %573 = vmatpush1.msra.mxu0 %v570_v20 }
  0xf1   : > { %1149 = vmatmul.mubr.msk.f32.vlgmr.msra.gmra.mrb[2].mxu1 %vm378_vm2, %v1340_v25  ;;  %1156 = vmatmul.mubr.msk.f32.vlgmr.msra.gmra.mrb[2].mxu0 %vm378_vm2, %v1340_v25 }
  0xf2   : > { %1164 = vmatprep.subr.msk.mxu1 %vm290_vm0, %v678_v26  ;;  %455 = vmatprep.mubr.f32.mxu1 %v1246_v0 }
  0xf3   : > { %642 = vmatprep.mubr.f32.mxu0 %v1246_v0  ;;  %1165 = vmatpush1.msk.msra.mxu1 %vm290_vm0, %v1163_v19 }
  0xf4   : > { %1175 = vmatprep.subr.msk.mxu0 %vm290_vm0, %v862_v27 }
  0xf5   : > { %1150 = vmatmul.mubr.msk.f32.gmra.mrb[4].mxu1 %vm378_vm2, %v1351_v28  ;;  %1157 = vmatmul.mubr.msk.f32.gmra.mrb[4].mxu0 %vm378_vm2, %v1351_v28 }
  0xf6   : > { %1176 = vmatpush1.msk.msra.mxu0 %vm290_vm0, %v1174_v23  ;;  %747 = vmatprep.mubr.f32.mxu1 %v1246_v0 }
  0xf7   : > { %931 = vmatprep.mubr.f32.mxu0 %v1246_v0 }
  0xf9   : > { %1166 = vmatmul.mubr.msk.f32.vlgmr.msra.gmra.mrb[6].mxu1 %vm286_vm1, %v272_v8  ;;  %1177 = vmatmul.mubr.msk.f32.vlgmr.msra.gmra.mrb[6].mxu0 %vm286_vm1, %v272_v8 }
  0xfa   : > { %820 = vmatprep.mubr.f32.mxu1 %v1246_v0  ;;  %1004 = vmatprep.mubr.f32.mxu0 %v1246_v0 }
 0x1c4   : > { %v451_v35 = vpop.f32.mrb[2].mxu1  ;;  %v638_v36 = vpop.f32.mrb[2].mxu0 }
 0x1c5   : > { %v452_v37 = vadd.f32 %v451_v35, %v1368_v34  ;;  %v639_v38 = vadd.f32 %v638_v36, %v1368_v34  ;;  %v453_v39 = vpop.f32.mrb[3].mxu1  ;;  %v640_v40 = vpop.f32.mrb[3].mxu0 }
 0x1c6   : > { %v454_v41 = vadd.f32 %v453_v39, %v1368_v34  ;;  %v641_v43 = vadd.f32 %v640_v40, %v1368_v34 }
 0x1c7   : > { %462 = vst [vmem:[%s1373_s17] sm:$0xff] %v452_v37  ;;  %1158 = vst [vmem:[%s1373_s17 + $0x30] sm:$0xff] %v639_v38 }
 0x1c8   : > { %463 = vst [vmem:[%s1373_s17 + $0x8] sm:$0xff] %v454_v41  ;;  %v468_v45 = vcombine.low %v452_v37, %v454_v41  ;;  %v656_v46 = vcombine.low %v639_v38, %v641_v43  ;;  %v457_v47 = vpop.f32.mrb[4].mxu1  ;;  %v644_v48 = vpop.f32.mrb[4].mxu0  ;;  %1159 = vst [vmem:[%s1373_s17 + $0x38] sm:$0xff] %v641_v43 }
 0x1c9   : > { %v458_v49 = vadd.f32 %v457_v47, %v1381_v44  ;;  %v645_v50 = vadd.f32 %v644_v48, %v1381_v44  ;;  %v459_v51 = vpop.f32.mrb[5].mxu1  ;;  %v646_v52 = vpop.f32.mrb[5].mxu0 }
 0x1ca   : > { %v475_v53 = vrot.slane %v468_v45, %v1378_v42  ;;  %v663_v54 = vrot.slane %v656_v46, %v1378_v42  ;;  %v460_v55 = vadd.f32 %v459_v51, %v1381_v44  ;;  %v647_v56 = vadd.f32 %v646_v52, %v1381_v44 }
 0x1cb   : > { %464 = vst [vmem:[%s1373_s17 + $0x10] sm:$0xff] %v458_v49  ;;  %1160 = vst [vmem:[%s1373_s17 + $0x40] sm:$0xff] %v645_v50 }
 0x1cc   : > { %v482_v58 = vrot.slane %v475_v53, %v1378_v42  ;;  %v670_v59 = vrot.slane %v663_v54, %v1378_v42  ;;  %465 = vst [vmem:[%s1373_s17 + $0x18] sm:$0xff] %v460_v55  ;;  %v749_v60 = vpop.f32.mrb[6].mxu1  ;;  %v933_v61 = vpop.f32.mrb[6].mxu0  ;;  %1161 = vst [vmem:[%s1373_s17 + $0x48] sm:$0xff] %v647_v56 }
 0x1cd   : > { %v750_v62 = vadd.f32 %v749_v60, %v1329_v10  ;;  %v934_v63 = vadd.f32 %v933_v61, %v1329_v10  ;;  %v751_v1 = vpop.f32.mrb[7].mxu1  ;;  %v935_v2 = vpop.f32.mrb[7].mxu0 }
 0x1ce   : > { %1151 = vst.msk [vmem:[%s1373_s17 + $0x20] ss:$8 sm:$0x3] %vm1393_vm3, %v482_v58  ;;  %v752_v3 = vadd.f32 %v751_v1, %v1329_v10  ;;  %v936_v4 = vadd.f32 %v935_v2, %v1329_v10  ;;  %1162 = vst.msk [vmem:[%s1373_s17 + $0x50] ss:$8 sm:$0x3] %vm1393_vm3, %v670_v59 }
 0x1cf   : > { %v754_v7 = vmax.f32 %v750_v62, 0.0  ;;  %v938_v8 = vmax.f32 %v934_v63, 0.0 }
 0x1d0   : > { %v755_v5 = vmax.f32 %v752_v3, 0.0  ;;  %v939_v6 = vmax.f32 %v936_v4, 0.0 }
 0x1d2   : > { %756 = vmatprep.subr.mxu1 %v755_v5  ;;  %940 = vmatprep.subr.mxu0 %v939_v6 }
 0x1d3   : > { %757 = vmatpush1.msra.mxu1 %v754_v7  ;;  %941 = vmatpush1.msra.mxu0 %v938_v8 }
 0x1d4   : > { %1167 = vmatmul.mubr.msk.f32.vlgmr.msra.gmra.mrb[8].mxu1 %vm378_vm2, %v1340_v25  ;;  %1178 = vmatmul.mubr.msk.f32.vlgmr.msra.gmra.mrb[8].mxu0 %vm378_vm2, %v1340_v25 }
 0x1d5   : > { %826 = vmatprep.mubr.f32.mxu1 %v1246_v0  ;;  %1010 = vmatprep.mubr.f32.mxu0 %v1246_v0 }
 0x1d8   : > { %1168 = vmatmul.mubr.msk.f32.gmra.mrb[10].mxu1 %vm378_vm2, %v1351_v28  ;;  %1179 = vmatmul.mubr.msk.f32.gmra.mrb[10].mxu0 %vm378_vm2, %v1351_v28 }
 0x2a7   : > { %v822_v9 = vpop.f32.mrb[8].mxu1  ;;  %v1006_v10 = vpop.f32.mrb[8].mxu0 }
 0x2a8   : > { %v823_v11 = vadd.f32 %v822_v9, %v1368_v34  ;;  %v1007_v12 = vadd.f32 %v1006_v10, %v1368_v34  ;;  %v824_v13 = vpop.f32.mrb[9].mxu1  ;;  %v1008_v14 = vpop.f32.mrb[9].mxu0 }
 0x2a9   : > { %v825_v15 = vadd.f32 %v824_v13, %v1368_v34  ;;  %v1009_v16 = vadd.f32 %v1008_v14, %v1368_v34 }
 0x2aa   : > { %1169 = vst [vmem:[%s1373_s17 + $0x60] sm:$0xff] %v823_v11  ;;  %1180 = vst [vmem:[%s1373_s17 + $0x90] sm:$0xff] %v1007_v12 }
 0x2ab   : > { %1170 = vst [vmem:[%s1373_s17 + $0x68] sm:$0xff] %v825_v15  ;;  %v840_v0 = vcombine.low %v823_v11, %v825_v15  ;;  %v1024_v17 = vcombine.low %v1007_v12, %v1009_v16  ;;  %v828_v18 = vpop.f32.mrb[10].mxu1  ;;  %v1012_v19 = vpop.f32.mrb[10].mxu0  ;;  %1181 = vst [vmem:[%s1373_s17 + $0x98] sm:$0xff] %v1009_v16 }
 0x2ac   : > { %v829_v20 = vadd.f32 %v828_v18, %v1381_v44  ;;  %v830_v21 = vpop.f32.mrb[11].mxu1  ;;  %v1013_v22 = vadd.f32 %v1012_v19, %v1381_v44  ;;  %v1014_v23 = vpop.f32.mrb[11].mxu0 }
 0x2ad   : > { %v847_v24 = vrot.slane %v840_v0, %v1378_v42  ;;  %v1031_v25 = vrot.slane %v1024_v17, %v1378_v42  ;;  %v831_v26 = vadd.f32 %v830_v21, %v1381_v44  ;;  %v1015_v27 = vadd.f32 %v1014_v23, %v1381_v44 }
 0x2ae   : > { %1171 = vst [vmem:[%s1373_s17 + $0x70] sm:$0xff] %v829_v20  ;;  %1182 = vst [vmem:[%s1373_s17 + $0xa0] sm:$0xff] %v1013_v22 }
 0x2af   : > { %v854_v28 = vrot.slane %v847_v24, %v1378_v42  ;;  %v1038_v29 = vrot.slane %v1031_v25, %v1378_v42  ;;  %1172 = vst [vmem:[%s1373_s17 + $0x78] sm:$0xff] %v831_v26  ;;  %1183 = vst [vmem:[%s1373_s17 + $0xa8] sm:$0xff] %v1015_v27 }
 0x2b1   : > { %1173 = vst.msk [vmem:[%s1373_s17 + $0x80] ss:$8 sm:$0x3] %vm1393_vm3, %v854_v28  ;;  %1184 = vst.msk [vmem:[%s1373_s17 + $0xb0] ss:$8 sm:$0x3] %vm1393_vm3, %v1038_v29 }
 0x2b2 PF: > { %s15_s20 = sadd.s32 1, %s1244_s20   ;;  %s1466_s18 = smov %s1240_s19 }
 0x2b3   : > { %p12_p5 = scmp.ge.s32.totalorder %s15_s20, 4   ;;  %s1467_s19 = smov %s1469_s21 }
 0x2b5   :  { %14 = sbr.rel (!%p12_p5) target bundleno = 2 (0x2), region = 80 }

</bundles_post_ra>
